<compile_context>
chip_gen: v5e
topology: v5e:2x2
jax: 0.10.0
libtpu: 0.0.40
codegen_flags: <defaults>
</compile_context>

<pallas_src>
import functools

import jax
import jax.numpy as jnp
from jax.experimental import pallas as pl
from jax.experimental.pallas import tpu as pltpu

_SQRT2 = 1.4142135623730951
_ROW_TILE = 512                      # elementwise/matmul row tile (was 128)
_VMEM_LIMIT = 64 * 1024 * 1024


def _cp(sem):
    return pltpu.CompilerParams(dimension_semantics=sem,
                                vmem_limit_bytes=_VMEM_LIMIT)


def _row_tile(p):
    return p if p <= _ROW_TILE else _ROW_TILE


def _div_tile(p, target=512):
    # largest tile <= target that divides p (exact division keeps reductions clean)
    if p <= target:
        return p
    for t in range(target, 7, -1):
        if p % t == 0 and t % 8 == 0:
            return t
    return p


# ----------------------------- matmul (1x1 conv) kernels -----------------------------

def _mm_kernel(a_ref, w_ref, o_ref):
    o_ref[...] = jnp.dot(a_ref[...].astype(jnp.bfloat16), w_ref[...],
                         preferred_element_type=jnp.float32)


def _mm_res_kernel(a_ref, w_ref, r_ref, o_ref):
    o_ref[...] = jnp.dot(a_ref[...].astype(jnp.bfloat16), w_ref[...],
                         preferred_element_type=jnp.float32) + r_ref[...]


def _mm_ln_kernel(a_ref, g_ref, b_ref, w_ref, o_ref):
    x = a_ref[...]
    mu = jnp.mean(x, axis=-1, keepdims=True)
    xc = x - mu
    var = jnp.mean(xc * xc, axis=-1, keepdims=True)
    xn = xc * jax.lax.rsqrt(var + 1e-5) * g_ref[...] + b_ref[...]
    o_ref[...] = jnp.dot(xn.astype(jnp.bfloat16), w_ref[...],
                         preferred_element_type=jnp.float32)


def _matmul(a, w, ln=None, residual=None):
    """a: (P, K) f32/bf16, w: (K, N) bf16 -> (P, N) f32.
    Optional fused row LayerNorm prologue and residual-add epilogue."""
    assert ln is None or residual is None
    p, k = a.shape
    nout = w.shape[1]
    bp = _row_tile(p)
    grid = (pl.cdiv(p, bp),)
    cp = _cp(("parallel",))
    out_shape = jax.ShapeDtypeStruct((p, nout), jnp.float32)
    a_spec = pl.BlockSpec((bp, k), lambda i: (i, 0))
    w_spec = pl.BlockSpec((k, nout), lambda i: (0, 0))
    o_spec = pl.BlockSpec((bp, nout), lambda i: (i, 0))
    if ln is not None:
        g, b = ln
        v_spec = pl.BlockSpec((1, k), lambda i: (0, 0))
        return pl.pallas_call(
            _mm_ln_kernel, out_shape=out_shape, grid=grid,
            in_specs=[a_spec, v_spec, v_spec, w_spec], out_specs=o_spec,
            compiler_params=cp,
        )(a, g.reshape(1, k), b.reshape(1, k), w)
    if residual is not None:
        r_spec = pl.BlockSpec((bp, nout), lambda i: (i, 0))
        return pl.pallas_call(
            _mm_res_kernel, out_shape=out_shape, grid=grid,
            in_specs=[a_spec, w_spec, r_spec], out_specs=o_spec,
            compiler_params=cp,
        )(a, w, residual)
    return pl.pallas_call(
        _mm_kernel, out_shape=out_shape, grid=grid,
        in_specs=[a_spec, w_spec], out_specs=o_spec, compiler_params=cp,
    )(a, w)


def conv1x1(x, w_torch, ln=None, residual=None):
    # x: (N, H, W, Cin) f32; w_torch: (Cout, Cin, 1, 1)
    n, h, w, cin = x.shape
    cout = w_torch.shape[0]
    wm = jnp.transpose(w_torch.reshape(cout, cin)).astype(jnp.bfloat16)
    res = residual.reshape(n * h * w, cout) if residual is not None else None
    out = _matmul(x.reshape(n * h * w, cin), wm, ln=ln, residual=res)
    return out.reshape(n, h, w, cout)


def conv3x3(x, w_torch, residual=None):
    # Dense 3x3, stride 1, pad 1, no bias.  x: (N,H,W,Cin), w: (Cout,Cin,3,3).
    # TODO(synk): pull the 9-tap gather in-kernel (halo blocks) like dwconv3x3;
    # these dense convs (embed/down/up/output) are off the hot path so a bf16
    # im2col + fused matmul is used for now.
    n, h, w, cin = x.shape
    cout = w_torch.shape[0]
    xp = jnp.pad(x.astype(jnp.bfloat16), ((0, 0), (1, 1), (1, 1), (0, 0)))
    cols = [xp[:, ky:ky + h, kx:kx + w, :] for ky in range(3) for kx in range(3)]
    a = jnp.concatenate(cols, axis=-1).reshape(n * h * w, 9 * cin)
    wm = jnp.transpose(w_torch, (2, 3, 1, 0)).reshape(9 * cin, cout).astype(jnp.bfloat16)
    res = residual.reshape(n * h * w, cout) if residual is not None else None
    return _matmul(a, wm, residual=res).reshape(n, h, w, cout)


# ----------------------------- depthwise 3x3 conv kernel -----------------------------

@functools.lru_cache(maxsize=None)
def _make_dwconv_kernel(H, W, C, gate):
    def kernel(x_ref, w_ref, o_ref):
        # x_ref: (1, H+2, W+2, C) halo-padded image; w_ref: (9, 1, 1, C)
        acc = x_ref[0, 0:H, 0:W, :] * w_ref[0]
        for k in range(1, 9):
            ky, kx = divmod(k, 3)
            acc = acc + x_ref[0, ky:ky + H, kx:kx + W, :] * w_ref[k]
        if gate:
            hidden = C // 2
            x1 = acc[..., :hidden]
            x2 = acc[..., hidden:]
            o_ref[0] = 0.5 * x1 * (1.0 + jax.lax.erf(x1 * (1.0 / _SQRT2))) * x2
        else:
            o_ref[0] = acc
    return kernel


def dwconv3x3(x, w_torch, gate=False):
    # Depthwise 3x3, pad 1, groups=C, no bias.  x: (N,H,W,C), w: (C,1,3,3).
    # gate=True additionally fuses the GDFN gelu(first half)*second half.
    # TODO(synk): row-chunk the image (with a 1-row halo) for very large H*W so
    # one block always stays well under VMEM on v7x.
    n, h, w, c = x.shape
    cout = c // 2 if gate else c
    xp = jnp.pad(x, ((0, 0), (1, 1), (1, 1), (0, 0)))
    wk = jnp.transpose(w_torch.reshape(c, 9), (1, 0)).reshape(9, 1, 1, c)
    kernel = _make_dwconv_kernel(h, w, c, gate)
    return pl.pallas_call(
        kernel,
        out_shape=jax.ShapeDtypeStruct((n, h, w, cout), jnp.float32),
        grid=(n,),
        in_specs=[pl.BlockSpec((1, h + 2, w + 2, c), lambda i: (i, 0, 0, 0)),
                  pl.BlockSpec((9, 1, 1, c), lambda i: (0, 0, 0, 0))],
        out_specs=pl.BlockSpec((1, h, w, cout), lambda i: (i, 0, 0, 0)),
        compiler_params=_cp(("parallel",)),
    )(xp, wk)


# ----------------------------- MDTA attention kernels -----------------------------

@functools.lru_cache(maxsize=None)
def _make_mdta_attn_kernel(C, heads, n_hw_tiles):
    ch = C // heads

    def kernel(qkv_ref, t_ref, attn_ref, acc_ref, sq_ref, sk_ref):
        ti = pl.program_id(1)

        @pl.when(ti == 0)
        def _init():
            acc_ref[...] = jnp.zeros_like(acc_ref)
            sq_ref[...] = jnp.zeros_like(sq_ref)
            sk_ref[...] = jnp.zeros_like(sk_ref)

        x = qkv_ref[0]                                   # (hw_t, 3C) f32
        for h in range(heads):
            q = x[:, h * ch:(h + 1) * ch]                # (hw_t, ch)
            k = x[:, C + h * ch:C + (h + 1) * ch]
            acc_ref[h] += jax.lax.dot_general(
                q.astype(jnp.bfloat16), k.astype(jnp.bfloat16),
                (((0,), (0,)), ((), ())), preferred_element_type=jnp.float32)
            sq_ref[h] += jnp.sum(q * q, axis=0, keepdims=True)
            sk_ref[h] += jnp.sum(k * k, axis=0, keepdims=True)

        @pl.when(ti == n_hw_tiles - 1)
        def _finalize():
            for h in range(heads):
                inv_q = 1.0 / jnp.maximum(jnp.sqrt(sq_ref[h]), 1e-12)   # (1, ch)
                inv_k = 1.0 / jnp.maximum(jnp.sqrt(sk_ref[h]), 1e-12)   # (1, ch)
                inv_q_col = jnp.transpose(jnp.broadcast_to(inv_q, (ch, ch)))
                logits = acc_ref[h] * inv_q_col * inv_k * t_ref[h]
                m = jnp.max(logits, axis=-1, keepdims=True)
                e = jnp.exp(logits - m)
                attn_ref[0, h] = e * pl.reciprocal(
                    jnp.sum(e, axis=-1, keepdims=True), approx=True)

    return kernel


@functools.lru_cache(maxsize=None)
def _make_mdta_apply_kernel(C, heads):
    ch = C // heads

    def kernel(qkv_ref, attn_ref, o_ref):
        x = qkv_ref[0]                                   # (hw_t, 3C)
        for h in range(heads):
            v = x[:, 2 * C + h * ch:2 * C + (h + 1) * ch]      # (hw_t, ch)
            a = attn_ref[0, h].astype(jnp.bfloat16)            # (ch, ch)
            o_ref[0, :, h * ch:(h + 1) * ch] = jax.lax.dot_general(
                v.astype(jnp.bfloat16), a, (((1,), (1,)), ((), ())),
                preferred_element_type=jnp.float32)

    return kernel


def mdta_attention(qkv, temperature, C, heads):
    # qkv: (N, HW, 3C) token-major f32; temperature: (heads,) f32 -> (N, HW, C)
    n, hw, c3 = qkv.shape
    ch = C // heads
    hw_t = _div_tile(hw)
    n_t = hw // hw_t
    t_bc = jnp.broadcast_to(temperature.reshape(heads, 1, 1), (heads, 1, ch))

    attn = pl.pallas_call(
        _make_mdta_attn_kernel(C, heads, n_t),
        out_shape=jax.ShapeDtypeStruct((n, heads, ch, ch), jnp.float32),
        grid=(n, n_t),
        in_specs=[pl.BlockSpec((1, hw_t, c3), lambda i, t: (i, t, 0)),
                  pl.BlockSpec((heads, 1, ch), lambda i, t: (0, 0, 0))],
        out_specs=pl.BlockSpec((1, heads, ch, ch), lambda i, t: (i, 0, 0, 0)),
        scratch_shapes=[pltpu.VMEM((heads, ch, ch), jnp.float32),
                        pltpu.VMEM((heads, 1, ch), jnp.float32),
                        pltpu.VMEM((heads, 1, ch), jnp.float32)],
        compiler_params=_cp(("parallel", "arbitrary")),
    )(qkv, t_bc)

    out = pl.pallas_call(
        _make_mdta_apply_kernel(C, heads),
        out_shape=jax.ShapeDtypeStruct((n, hw, C), jnp.float32),
        grid=(n, n_t),
        in_specs=[pl.BlockSpec((1, hw_t, c3), lambda i, t: (i, t, 0)),
                  pl.BlockSpec((1, heads, ch, ch), lambda i, t: (i, 0, 0, 0))],
        out_specs=pl.BlockSpec((1, hw_t, C), lambda i, t: (i, t, 0)),
        compiler_params=_cp(("parallel", "parallel")),
    )(qkv, attn)
    return out


# ----------------------------- Restormer modules (NHWC) -----------------------------

def mdta_block(x, p, ln_w, ln_b):
    # x + MDTA(LayerNorm(x)); LN fused into qkv 1x1, residual into proj 1x1.
    n, h, w, c = x.shape
    heads = p['temperature'].shape[1]
    qkv = conv1x1(x, p['qkv_w'], ln=(ln_w, ln_b))
    qkv = dwconv3x3(qkv, p['qkv_conv_w'])
    o = mdta_attention(qkv.reshape(n, h * w, 3 * c),
                       p['temperature'].reshape(heads), c, heads)
    return conv1x1(o.reshape(n, h, w, c), p['proj_w'], residual=x)


def gdfn_block(x, p, ln_w, ln_b):
    # x + GDFN(LayerNorm(x)); LN fused into project_in, gelu-gate fused into the
    # depthwise conv, residual fused into project_out.
    t = conv1x1(x, p['in_w'], ln=(ln_w, ln_b))
    g = dwconv3x3(t, p['conv_w'], gate=True)
    return conv1x1(g, p['out_w'], residual=x)


def transformer_block(x, p):
    x = mdta_block(x, p['attn'], p['ln1_w'], p['ln1_b'])
    x = gdfn_block(x, p['ffn'], p['ln2_w'], p['ln2_b'])
    return x


def block_seq(x, plist):
    for p in plist:
        x = transformer_block(x, p)
    return x


def pixel_unshuffle(x, r=2):
    n, h, w, c = x.shape
    x = x.reshape(n, h // r, r, w // r, r, c)
    x = jnp.transpose(x, (0, 1, 3, 5, 2, 4))
    return x.reshape(n, h // r, w // r, c * r * r)


def pixel_shuffle(x, r=2):
    n, h, w, c = x.shape
    co = c // (r * r)
    x = x.reshape(n, h, w, co, r, r)
    x = jnp.transpose(x, (0, 1, 4, 2, 5, 3))
    return x.reshape(n, h * r, w * r, co)


def downsample(x, w):
    return pixel_unshuffle(conv3x3(x, w), 2)


def upsample(x, w):
    return pixel_shuffle(conv3x3(x, w), 2)


def restormer_forward(x_nchw, params):
    x = jnp.transpose(x_nchw, (0, 2, 3, 1))                 # NHWC everywhere inside
    fo = conv3x3(x, params['embed'])
    e1 = block_seq(fo, params['enc'][0])
    e2 = block_seq(downsample(e1, params['down'][0]), params['enc'][1])
    e3 = block_seq(downsample(e2, params['down'][1]), params['enc'][2])
    e4 = block_seq(downsample(e3, params['down'][2]), params['enc'][3])

    d3 = block_seq(conv1x1(jnp.concatenate([upsample(e4, params['up'][0]), e3], axis=-1),
                           params['reduce'][0]), params['dec'][0])
    d2 = block_seq(conv1x1(jnp.concatenate([upsample(d3, params['up'][1]), e2], axis=-1),
                           params['reduce'][1]), params['dec'][1])
    fd = block_seq(jnp.concatenate([upsample(d2, params['up'][2]), e1], axis=-1),
                   params['dec'][2])
    fr = block_seq(fd, params['refine'])
    out = conv3x3(fr, params['output'], residual=x)          # residual add fused
    return jnp.transpose(out, (0, 3, 1, 2))


# ----------------------------- Parameter init -----------------------------

def init_params(key, num_blocks, num_heads, channels, num_refinement,
                expansion_factor, in_out_channels):
    keys = iter(jax.random.split(key, 1024))

    def nrm(shape):
        return 0.05 * jax.random.normal(next(keys), shape, dtype=jnp.float32)

    def tb(ch, heads):
        hidden = int(ch * expansion_factor)
        return {
            'ln1_w': jnp.ones((ch,), jnp.float32), 'ln1_b': jnp.zeros((ch,), jnp.float32),
            'ln2_w': jnp.ones((ch,), jnp.float32), 'ln2_b': jnp.zeros((ch,), jnp.float32),
            'attn': {'temperature': jnp.ones((1, heads, 1, 1), jnp.float32),
                     'qkv_w': nrm((3 * ch, ch, 1, 1)),
                     'qkv_conv_w': nrm((3 * ch, 1, 3, 3)),
                     'proj_w': nrm((ch, ch, 1, 1))},
            'ffn': {'in_w': nrm((2 * hidden, ch, 1, 1)),
                    'conv_w': nrm((2 * hidden, 1, 3, 3)),
                    'out_w': nrm((ch, hidden, 1, 1))},
        }

    params = {
        'embed': nrm((channels[0], in_out_channels, 3, 3)),
        'enc': [[tb(ch, ah) for _ in range(nb)]
                for nb, ah, ch in zip(num_blocks, num_heads, channels)],
        'down': [nrm((ch // 2, ch, 3, 3)) for ch in channels[:-1]],
        'up': [nrm((ch * 2, ch, 3, 3)) for ch in list(reversed(channels))[:-1]],
        'reduce': [nrm((channels[i - 1], channels[i], 1, 1))
                   for i in reversed(range(2, len(channels)))],
        'dec': [[tb(channels[2], num_heads[2]) for _ in range(num_blocks[2])],
                [tb(channels[1], num_heads[1]) for _ in range(num_blocks[1])],
                [tb(channels[1], num_heads[0]) for _ in range(num_blocks[0])]],
        'refine': [tb(channels[1], num_heads[0]) for _ in range(num_refinement)],
        'output': nrm((in_out_channels, channels[1], 3, 3)),
    }
    return params


# ----------------------------- Main -----------------------------

if __name__ == "__main__":
    key = jax.random.PRNGKey(0)
    k_par, k_in = jax.random.split(key)

    # Small-but-consistent config (channels double per level; heads divide channels).
    cfg = dict(num_blocks=[1, 1, 1, 1], num_heads=[1, 2, 4, 8],
               channels=[8, 16, 32, 64], num_refinement=1,
               expansion_factor=2.66, in_out_channels=3)
    params = init_params(k_par, **cfg)

    x = jax.random.normal(k_in, (2, 3, 16, 16), dtype=jnp.float32)

    out = restormer_forward(x, params)
    out = jax.block_until_ready(out)

    assert out.shape == x.shape, out.shape
    assert bool(jnp.all(jnp.isfinite(out)))
    print("KERNEL_OK")
</pallas_src>

<mosaic_0001>
module attributes {stable_mosaic.version = 11 : i64} {
  func.func @_mm_kernel(%arg0: i32, %arg1: memref<512x27xbf16, #tpu.memory_space<vmem>>, %arg2: memref<27x8xbf16, #tpu.memory_space<vmem>>, %arg3: memref<512x8xf32, #tpu.memory_space<vmem>>) attributes {dimension_semantics = [#tpu.dimension_semantics<parallel>], iteration_bounds = array<i64: 1>, scalar_prefetch = 0 : i64, scratch_operands = 0 : i64, tpu.core_type = #tpu.core_type<tc>, window_params = [{transform_indices = @transform_0, window_bounds = array<i64: 512, 27>}, {pipeline_mode = #tpu.pipeline_mode<synchronous>, transform_indices = @transform_1, window_bounds = array<i64: 27, 8>}, {transform_indices = @transform_2, window_bounds = array<i64: 512, 8>}]} {
    %c0 = arith.constant 0 : index
    %c0_0 = arith.constant 0 : index
    %0 = vector.load %arg1[%c0, %c0_0] : memref<512x27xbf16, #tpu.memory_space<vmem>>, vector<512x27xbf16>
    %c0_1 = arith.constant 0 : index
    %c0_2 = arith.constant 0 : index
    %1 = vector.load %arg2[%c0_1, %c0_2] : memref<27x8xbf16, #tpu.memory_space<vmem>>, vector<27x8xbf16>
    %cst = arith.constant dense<0.000000e+00> : vector<512x8xf32>
    %2 = tpu.matmul %0, %1, %cst {dimension_numbers = #tpu.dot_dimension_numbers<[1], [0], [0], [1], [0, 0, 1, 1], [], []>} : vector<512x27xbf16>, vector<27x8xbf16>, vector<512x8xf32> -> vector<512x8xf32>
    %c0_3 = arith.constant 0 : index
    %c0_4 = arith.constant 0 : index
    %3 = vector.load %arg3[%c0_3, %c0_4] : memref<512x8xf32, #tpu.memory_space<vmem>>, vector<512x8xf32>
    tpu.vector_store %arg3[%c0_3, %c0_4], %2 {strides = array<i32>} : memref<512x8xf32, #tpu.memory_space<vmem>>, vector<512x8xf32>,
    return
  }
  func.func @transform_0(%arg0: i32) -> (i32, i32) {
    %c0_i32 = arith.constant 0 : i32
    %c0_i32_0 = arith.constant 0 : i32
    return %arg0, %c0_i32 : i32, i32
  }
  func.func @transform_1(%arg0: i32) -> (i32, i32) {
    %c0_i32 = arith.constant 0 : i32
    %c0_i32_0 = arith.constant 0 : i32
    %c0_i32_1 = arith.constant 0 : i32
    return %c0_i32, %c0_i32_0 : i32, i32
  }
  func.func @transform_2(%arg0: i32) -> (i32, i32) {
    %c0_i32 = arith.constant 0 : i32
    %c0_i32_0 = arith.constant 0 : i32
    return %arg0, %c0_i32 : i32, i32
  }
}

</mosaic_0001>

<bundles_post_ra>
// kernel: tpu_custom_call.1
= control target key start
LH: loop header
LB: loop body
LE: loop exit
PB: predicated region body
PF: predicated region fallthrough
CT: control target
= control target key end

     0   :  { %vm348_vm0 = vcmask 1044480   ;;  %vm349_vm1 = vcmask 1045504   ;;  %v802_v2 = vmov 65535   ;;  %vm251_vm2 = vcmask 220160   ;;  %s1211_s1 = inlined_call_operand.vmem [shape: bf16[27,8], index: 1, kind: input, shape index: {}]   ;;  %s1212_s0 = inlined_call_operand.vmem [shape: bf16[512,27], index: 0, kind: input, shape index: {}]   ;;  %s1213_s2 = inlined_call_operand.vmem [shape: f32[512,8], index: 2, kind: output, shape index: {}]  }
   0x1   :  { %v727_v0 = vld [vmem:[%s1211_s1 + $0x8] sm:$0xf]  ;;  %v794_v1 = vld [vmem:[%s1211_s1 + $0x8] sm:$0x30]  ;;  %v350_v3 = vsel %vm348_vm0, 4294967295, %v802_v2  ;;  %v793_v7 = vld [vmem:[%s1211_s1] sm:$0xff] }
   0x2   :  { %v728_v4 = vor.u32 %v794_v1, %v727_v0  ;;  %v351_v5 = vsel %vm349_vm1, %v350_v3, 0  ;;  %v761_v8 = vld [vmem:[%s1212_s0] sm:$0xff]  ;;  %v762_v12 = vld [vmem:[%s1212_s0 + $0x8] sm:$0xff]  ;;  %v763_v16 = vld [vmem:[%s1212_s0 + $0x10] sm:$0xff]  ;;  %vm524_vm3 = vcmask 64512  }
   0x3   :  { %v769_v9 = vld [vmem:[%s1212_s0 + $0x40] sm:$0xff]  ;;  %v770_v13 = vld [vmem:[%s1212_s0 + $0x48] sm:$0xff]  ;;  %v771_v17 = vld [vmem:[%s1212_s0 + $0x50] sm:$0xff] }
   0x4   :  { %v353_v6 = vand.u32 %v728_v4, %v351_v5  ;;  %v777_v10 = vld [vmem:[%s1212_s0 + $0x80] sm:$0xff]  ;;  %v778_v14 = vld [vmem:[%s1212_s0 + $0x88] sm:$0xff]  ;;  %v779_v18 = vld [vmem:[%s1212_s0 + $0x90] sm:$0xff] }
   0x5   :  { %v785_v11 = vld [vmem:[%s1212_s0 + $0xc0] sm:$0xff]  ;;  %v786_v15 = vld [vmem:[%s1212_s0 + $0xc8] sm:$0xff]  ;;  %v787_v19 = vld [vmem:[%s1212_s0 + $0xd0] sm:$0xff] }
   0x6   :  { %361 = vmatpush.bf16.msra.mxu0 %v353_v6  ;;  %795 = vmatpush.bf16.msra.mxu1 %v353_v6  ;;  %v764_v20 = vld [vmem:[%s1212_s0 + $0x18] sm:$0xff]  ;;  %v765_v24 = vld [vmem:[%s1212_s0 + $0x20] sm:$0xff]  ;;  %v766_v28 = vld [vmem:[%s1212_s0 + $0x28] sm:$0xff] }
   0x7   :  { %796 = vmatpush.bf16.msra.mxu2 %v353_v6  ;;  %797 = vmatpush.bf16.msra.mxu3 %v353_v6  ;;  %v772_v21 = vld [vmem:[%s1212_s0 + $0x58] sm:$0xff]  ;;  %v773_v25 = vld [vmem:[%s1212_s0 + $0x60] sm:$0xff]  ;;  %v774_v29 = vld [vmem:[%s1212_s0 + $0x68] sm:$0xff] }
   0x8   :  { %v780_v22 = vld [vmem:[%s1212_s0 + $0x98] sm:$0xff]  ;;  %v781_v26 = vld [vmem:[%s1212_s0 + $0xa0] sm:$0xff]  ;;  %v782_v30 = vld [vmem:[%s1212_s0 + $0xa8] sm:$0xff] }
   0x9   :  { %v788_v23 = vld [vmem:[%s1212_s0 + $0xd8] sm:$0xff]  ;;  %v789_v27 = vld [vmem:[%s1212_s0 + $0xe0] sm:$0xff]  ;;  %v790_v31 = vld [vmem:[%s1212_s0 + $0xe8] sm:$0xff] }
   0xa   :  { %362 = vmatpush.bf16.msra.mxu0 %v793_v7  ;;  %798 = vmatpush.bf16.msra.mxu1 %v793_v7  ;;  %v767_v32 = vld [vmem:[%s1212_s0 + $0x30] sm:$0xff]  ;;  %v768_v36 = vld [vmem:[%s1212_s0 + $0x38] sm:$0xff] }
   0xb   :  { %799 = vmatpush.bf16.msra.mxu2 %v793_v7  ;;  %800 = vmatpush.bf16.msra.mxu3 %v793_v7  ;;  %v775_v33 = vld [vmem:[%s1212_s0 + $0x70] sm:$0xff]  ;;  %v776_v37 = vld [vmem:[%s1212_s0 + $0x78] sm:$0xff] }
   0xc   :  { %v783_v34 = vld [vmem:[%s1212_s0 + $0xb0] sm:$0xff]  ;;  %v784_v38 = vld [vmem:[%s1212_s0 + $0xb8] sm:$0xff] }
   0xd   :  { %729 = vmatmul.msk.bf16.vlgmr.msra.gmra.mxu0 %vm251_vm2, %v761_v8  ;;  %737 = vmatmul.msk.bf16.vlgmr.msra.gmra.mxu1 %vm251_vm2, %v769_v9  ;;  %v791_v35 = vld [vmem:[%s1212_s0 + $0xf0] sm:$0xff]  ;;  %v792_v39 = vld [vmem:[%s1212_s0 + $0xf8] sm:$0xff] }
   0xe   :  { %745 = vmatmul.msk.bf16.vlgmr.msra.gmra.mxu2 %vm251_vm2, %v777_v10  ;;  %753 = vmatmul.msk.bf16.vlgmr.msra.gmra.mxu3 %vm251_vm2, %v785_v11 }
  0x1d   :  { %730 = vmatmul.msk.bf16.gmra.mxu0 %vm251_vm2, %v762_v12  ;;  %738 = vmatmul.msk.bf16.gmra.mxu1 %vm251_vm2, %v770_v13 }
  0x1e   :  { %746 = vmatmul.msk.bf16.gmra.mxu2 %vm251_vm2, %v778_v14  ;;  %754 = vmatmul.msk.bf16.gmra.mxu3 %vm251_vm2, %v786_v15 }
  0x2d   :  { %731 = vmatmul.msk.bf16.gmra.mxu0 %vm251_vm2, %v763_v16  ;;  %739 = vmatmul.msk.bf16.gmra.mxu1 %vm251_vm2, %v771_v17 }
  0x2e   :  { %747 = vmatmul.msk.bf16.gmra.mxu2 %vm251_vm2, %v779_v18  ;;  %755 = vmatmul.msk.bf16.gmra.mxu3 %vm251_vm2, %v787_v19 }
  0x3d   :  { %732 = vmatmul.msk.bf16.gmra.mxu0 %vm251_vm2, %v764_v20  ;;  %740 = vmatmul.msk.bf16.gmra.mxu1 %vm251_vm2, %v772_v21 }
  0x3e   :  { %748 = vmatmul.msk.bf16.gmra.mxu2 %vm251_vm2, %v780_v22  ;;  %756 = vmatmul.msk.bf16.gmra.mxu3 %vm251_vm2, %v788_v23 }
  0x4d   :  { %733 = vmatmul.msk.bf16.gmra.mxu0 %vm251_vm2, %v765_v24  ;;  %741 = vmatmul.msk.bf16.gmra.mxu1 %vm251_vm2, %v773_v25 }
  0x4e   :  { %749 = vmatmul.msk.bf16.gmra.mxu2 %vm251_vm2, %v781_v26  ;;  %757 = vmatmul.msk.bf16.gmra.mxu3 %vm251_vm2, %v789_v27 }
  0x5d   :  { %734 = vmatmul.msk.bf16.gmra.mxu0 %vm251_vm2, %v766_v28  ;;  %742 = vmatmul.msk.bf16.gmra.mxu1 %vm251_vm2, %v774_v29 }
  0x5e   :  { %750 = vmatmul.msk.bf16.gmra.mxu2 %vm251_vm2, %v782_v30  ;;  %758 = vmatmul.msk.bf16.gmra.mxu3 %vm251_vm2, %v790_v31 }
  0x6d   :  { %735 = vmatmul.msk.bf16.gmra.mxu0 %vm251_vm2, %v767_v32  ;;  %743 = vmatmul.msk.bf16.gmra.mxu1 %vm251_vm2, %v775_v33 }
  0x6e   :  { %751 = vmatmul.msk.bf16.gmra.mxu2 %vm251_vm2, %v783_v34  ;;  %759 = vmatmul.msk.bf16.gmra.mxu3 %vm251_vm2, %v791_v35 }
  0x7d   :  { %736 = vmatmul.msk.bf16.gmra.mxu0 %vm251_vm2, %v768_v36  ;;  %744 = vmatmul.msk.bf16.gmra.mxu1 %vm251_vm2, %v776_v37 }
  0x7e   :  { %752 = vmatmul.msk.bf16.gmra.mxu2 %vm251_vm2, %v784_v38  ;;  %760 = vmatmul.msk.bf16.gmra.mxu3 %vm251_vm2, %v792_v39 }
  0x8a   :  { %v364_v40 = vpop.f32.mrf.mxu0  ;;  %v404_v41 = vpop.f32.mrf.mxu1 }
  0x8b   :  { %525 = vst.msk [vmem:[%s1213_s2] sm:$0xff] %vm524_vm3, %v364_v40 }
  0x8c   :  { %541 = vst.msk [vmem:[%s1213_s2 + $0x80] sm:$0xff] %vm524_vm3, %v404_v41 }
  0x91   :  { %v444_v42 = vpop.f32.mrf.mxu2  ;;  %v484_v43 = vpop.f32.mrf.mxu3 }
  0x92   :  { %557 = vst.msk [vmem:[%s1213_s2 + $0x100] sm:$0xff] %vm524_vm3, %v444_v42  ;;  %v366_v44 = vpop.f32.mrf.mxu0  ;;  %v406_v45 = vpop.f32.mrf.mxu1 }
  0x93   :  { %573 = vst.msk [vmem:[%s1213_s2 + $0x180] sm:$0xff] %vm524_vm3, %v484_v43 }
  0x94   :  { %526 = vst.msk [vmem:[%s1213_s2 + $0x8] sm:$0xff] %vm524_vm3, %v366_v44 }
  0x95   :  { %542 = vst.msk [vmem:[%s1213_s2 + $0x88] sm:$0xff] %vm524_vm3, %v406_v45 }
  0x99   :  { %v446_v46 = vpop.f32.mrf.mxu2  ;;  %v486_v47 = vpop.f32.mrf.mxu3 }
  0x9a   :  { %558 = vst.msk [vmem:[%s1213_s2 + $0x108] sm:$0xff] %vm524_vm3, %v446_v46  ;;  %v369_v48 = vpop.f32.mrf.mxu0  ;;  %v409_v49 = vpop.f32.mrf.mxu1 }
  0x9b   :  { %574 = vst.msk [vmem:[%s1213_s2 + $0x188] sm:$0xff] %vm524_vm3, %v486_v47 }
  0x9c   :  { %527 = vst.msk [vmem:[%s1213_s2 + $0x10] sm:$0xff] %vm524_vm3, %v369_v48 }
  0x9d   :  { %543 = vst.msk [vmem:[%s1213_s2 + $0x90] sm:$0xff] %vm524_vm3, %v409_v49 }
  0xa1   :  { %v449_v50 = vpop.f32.mrf.mxu2  ;;  %v489_v51 = vpop.f32.mrf.mxu3 }
  0xa2   :  { %559 = vst.msk [vmem:[%s1213_s2 + $0x110] sm:$0xff] %vm524_vm3, %v449_v50  ;;  %v371_v52 = vpop.f32.mrf.mxu0  ;;  %v411_v53 = vpop.f32.mrf.mxu1 }
  0xa3   :  { %575 = vst.msk [vmem:[%s1213_s2 + $0x190] sm:$0xff] %vm524_vm3, %v489_v51 }
  0xa4   :  { %528 = vst.msk [vmem:[%s1213_s2 + $0x18] sm:$0xff] %vm524_vm3, %v371_v52 }
  0xa5   :  { %544 = vst.msk [vmem:[%s1213_s2 + $0x98] sm:$0xff] %vm524_vm3, %v411_v53 }
  0xa9   :  { %v451_v54 = vpop.f32.mrf.mxu2  ;;  %v491_v55 = vpop.f32.mrf.mxu3 }
  0xaa   :  { %560 = vst.msk [vmem:[%s1213_s2 + $0x118] sm:$0xff] %vm524_vm3, %v451_v54  ;;  %v374_v56 = vpop.f32.mrf.mxu0  ;;  %v414_v57 = vpop.f32.mrf.mxu1 }
  0xab   :  { %576 = vst.msk [vmem:[%s1213_s2 + $0x198] sm:$0xff] %vm524_vm3, %v491_v55 }
  0xac   :  { %529 = vst.msk [vmem:[%s1213_s2 + $0x20] sm:$0xff] %vm524_vm3, %v374_v56 }
  0xad   :  { %545 = vst.msk [vmem:[%s1213_s2 + $0xa0] sm:$0xff] %vm524_vm3, %v414_v57 }
  0xb1   :  { %v454_v58 = vpop.f32.mrf.mxu2  ;;  %v494_v59 = vpop.f32.mrf.mxu3 }
  0xb2   :  { %561 = vst.msk [vmem:[%s1213_s2 + $0x120] sm:$0xff] %vm524_vm3, %v454_v58  ;;  %v376_v60 = vpop.f32.mrf.mxu0  ;;  %v416_v61 = vpop.f32.mrf.mxu1 }
  0xb3   :  { %577 = vst.msk [vmem:[%s1213_s2 + $0x1a0] sm:$0xff] %vm524_vm3, %v494_v59 }
  0xb4   :  { %530 = vst.msk [vmem:[%s1213_s2 + $0x28] sm:$0xff] %vm524_vm3, %v376_v60 }
  0xb5   :  { %546 = vst.msk [vmem:[%s1213_s2 + $0xa8] sm:$0xff] %vm524_vm3, %v416_v61 }
  0xb9   :  { %v456_v62 = vpop.f32.mrf.mxu2  ;;  %v496_v63 = vpop.f32.mrf.mxu3 }
  0xba   :  { %562 = vst.msk [vmem:[%s1213_s2 + $0x128] sm:$0xff] %vm524_vm3, %v456_v62  ;;  %v379_v0 = vpop.f32.mrf.mxu0  ;;  %v419_v1 = vpop.f32.mrf.mxu1 }
  0xbb   :  { %578 = vst.msk [vmem:[%s1213_s2 + $0x1a8] sm:$0xff] %vm524_vm3, %v496_v63 }
  0xbc   :  { %531 = vst.msk [vmem:[%s1213_s2 + $0x30] sm:$0xff] %vm524_vm3, %v379_v0 }
  0xbd   :  { %547 = vst.msk [vmem:[%s1213_s2 + $0xb0] sm:$0xff] %vm524_vm3, %v419_v1 }
  0xc1   :  { %v459_v2 = vpop.f32.mrf.mxu2  ;;  %v499_v3 = vpop.f32.mrf.mxu3 }
  0xc2   :  { %563 = vst.msk [vmem:[%s1213_s2 + $0x130] sm:$0xff] %vm524_vm3, %v459_v2  ;;  %v381_v4 = vpop.f32.mrf.mxu0  ;;  %v421_v5 = vpop.f32.mrf.mxu1 }
  0xc3   :  { %579 = vst.msk [vmem:[%s1213_s2 + $0x1b0] sm:$0xff] %vm524_vm3, %v499_v3 }
  0xc4   :  { %532 = vst.msk [vmem:[%s1213_s2 + $0x38] sm:$0xff] %vm524_vm3, %v381_v4 }
  0xc5   :  { %548 = vst.msk [vmem:[%s1213_s2 + $0xb8] sm:$0xff] %vm524_vm3, %v421_v5 }
  0xc9   :  { %v461_v6 = vpop.f32.mrf.mxu2  ;;  %v501_v7 = vpop.f32.mrf.mxu3 }
  0xca   :  { %564 = vst.msk [vmem:[%s1213_s2 + $0x138] sm:$0xff] %vm524_vm3, %v461_v6  ;;  %v384_v8 = vpop.f32.mrf.mxu0  ;;  %v424_v9 = vpop.f32.mrf.mxu1 }
  0xcb   :  { %580 = vst.msk [vmem:[%s1213_s2 + $0x1b8] sm:$0xff] %vm524_vm3, %v501_v7 }
  0xcc   :  { %533 = vst.msk [vmem:[%s1213_s2 + $0x40] sm:$0xff] %vm524_vm3, %v384_v8 }
  0xcd   :  { %549 = vst.msk [vmem:[%s1213_s2 + $0xc0] sm:$0xff] %vm524_vm3, %v424_v9 }
  0xd1   :  { %v464_v10 = vpop.f32.mrf.mxu2  ;;  %v504_v11 = vpop.f32.mrf.mxu3 }
  0xd2   :  { %565 = vst.msk [vmem:[%s1213_s2 + $0x140] sm:$0xff] %vm524_vm3, %v464_v10  ;;  %v386_v12 = vpop.f32.mrf.mxu0  ;;  %v426_v13 = vpop.f32.mrf.mxu1 }
  0xd3   :  { %581 = vst.msk [vmem:[%s1213_s2 + $0x1c0] sm:$0xff] %vm524_vm3, %v504_v11 }
  0xd4   :  { %534 = vst.msk [vmem:[%s1213_s2 + $0x48] sm:$0xff] %vm524_vm3, %v386_v12 }
  0xd5   :  { %550 = vst.msk [vmem:[%s1213_s2 + $0xc8] sm:$0xff] %vm524_vm3, %v426_v13 }
  0xd9   :  { %v466_v14 = vpop.f32.mrf.mxu2  ;;  %v506_v15 = vpop.f32.mrf.mxu3 }
  0xda   :  { %566 = vst.msk [vmem:[%s1213_s2 + $0x148] sm:$0xff] %vm524_vm3, %v466_v14  ;;  %v389_v16 = vpop.f32.mrf.mxu0  ;;  %v429_v17 = vpop.f32.mrf.mxu1 }
  0xdb   :  { %582 = vst.msk [vmem:[%s1213_s2 + $0x1c8] sm:$0xff] %vm524_vm3, %v506_v15 }
  0xdc   :  { %535 = vst.msk [vmem:[%s1213_s2 + $0x50] sm:$0xff] %vm524_vm3, %v389_v16 }
  0xdd   :  { %551 = vst.msk [vmem:[%s1213_s2 + $0xd0] sm:$0xff] %vm524_vm3, %v429_v17 }
  0xe1   :  { %v469_v18 = vpop.f32.mrf.mxu2  ;;  %v509_v19 = vpop.f32.mrf.mxu3 }
  0xe2   :  { %567 = vst.msk [vmem:[%s1213_s2 + $0x150] sm:$0xff] %vm524_vm3, %v469_v18  ;;  %v391_v20 = vpop.f32.mrf.mxu0  ;;  %v431_v21 = vpop.f32.mrf.mxu1 }
  0xe3   :  { %583 = vst.msk [vmem:[%s1213_s2 + $0x1d0] sm:$0xff] %vm524_vm3, %v509_v19 }
  0xe4   :  { %536 = vst.msk [vmem:[%s1213_s2 + $0x58] sm:$0xff] %vm524_vm3, %v391_v20 }
  0xe5   :  { %552 = vst.msk [vmem:[%s1213_s2 + $0xd8] sm:$0xff] %vm524_vm3, %v431_v21 }
  0xe9   :  { %v471_v22 = vpop.f32.mrf.mxu2  ;;  %v511_v23 = vpop.f32.mrf.mxu3 }
  0xea   :  { %568 = vst.msk [vmem:[%s1213_s2 + $0x158] sm:$0xff] %vm524_vm3, %v471_v22  ;;  %v394_v24 = vpop.f32.mrf.mxu0  ;;  %v434_v25 = vpop.f32.mrf.mxu1 }
  0xeb   :  { %584 = vst.msk [vmem:[%s1213_s2 + $0x1d8] sm:$0xff] %vm524_vm3, %v511_v23 }
  0xec   :  { %537 = vst.msk [vmem:[%s1213_s2 + $0x60] sm:$0xff] %vm524_vm3, %v394_v24 }
  0xed   :  { %553 = vst.msk [vmem:[%s1213_s2 + $0xe0] sm:$0xff] %vm524_vm3, %v434_v25 }
  0xf1   :  { %v474_v26 = vpop.f32.mrf.mxu2  ;;  %v514_v27 = vpop.f32.mrf.mxu3 }
  0xf2   :  { %569 = vst.msk [vmem:[%s1213_s2 + $0x160] sm:$0xff] %vm524_vm3, %v474_v26  ;;  %v396_v28 = vpop.f32.mrf.mxu0  ;;  %v436_v29 = vpop.f32.mrf.mxu1 }
  0xf3   :  { %585 = vst.msk [vmem:[%s1213_s2 + $0x1e0] sm:$0xff] %vm524_vm3, %v514_v27 }
  0xf4   :  { %538 = vst.msk [vmem:[%s1213_s2 + $0x68] sm:$0xff] %vm524_vm3, %v396_v28 }
  0xf5   :  { %554 = vst.msk [vmem:[%s1213_s2 + $0xe8] sm:$0xff] %vm524_vm3, %v436_v29 }
  0xf9   :  { %v476_v30 = vpop.f32.mrf.mxu2  ;;  %v516_v31 = vpop.f32.mrf.mxu3 }
  0xfa   :  { %570 = vst.msk [vmem:[%s1213_s2 + $0x168] sm:$0xff] %vm524_vm3, %v476_v30  ;;  %v399_v32 = vpop.f32.mrf.mxu0  ;;  %v439_v33 = vpop.f32.mrf.mxu1 }
  0xfb   :  { %586 = vst.msk [vmem:[%s1213_s2 + $0x1e8] sm:$0xff] %vm524_vm3, %v516_v31 }
  0xfc   :  { %539 = vst.msk [vmem:[%s1213_s2 + $0x70] sm:$0xff] %vm524_vm3, %v399_v32 }
  0xfd   :  { %555 = vst.msk [vmem:[%s1213_s2 + $0xf0] sm:$0xff] %vm524_vm3, %v439_v33 }
 0x101   :  { %v479_v34 = vpop.f32.mrf.mxu2  ;;  %v519_v35 = vpop.f32.mrf.mxu3 }
 0x102   :  { %571 = vst.msk [vmem:[%s1213_s2 + $0x170] sm:$0xff] %vm524_vm3, %v479_v34  ;;  %v401_v36 = vpop.f32.mrf.mxu0  ;;  %v441_v37 = vpop.f32.mrf.mxu1 }
 0x103   :  { %587 = vst.msk [vmem:[%s1213_s2 + $0x1f0] sm:$0xff] %vm524_vm3, %v519_v35 }
 0x104   :  { %540 = vst.msk [vmem:[%s1213_s2 + $0x78] sm:$0xff] %vm524_vm3, %v401_v36 }
 0x105   :  { %556 = vst.msk [vmem:[%s1213_s2 + $0xf8] sm:$0xff] %vm524_vm3, %v441_v37 }
 0x109   :  { %v481_v38 = vpop.f32.mrf.mxu2  ;;  %v521_v39 = vpop.f32.mrf.mxu3 }
 0x10a   :  { %572 = vst.msk [vmem:[%s1213_s2 + $0x178] sm:$0xff] %vm524_vm3, %v481_v38 }
 0x10b   :  { %588 = vst.msk [vmem:[%s1213_s2 + $0x1f8] sm:$0xff] %vm524_vm3, %v521_v39 }

</bundles_post_ra>
